<compile_context>
chip_gen: v7x
topology: tpu7x:2x2x1
jax: 0.10.0
libtpu: 0.0.40
codegen_flags: <defaults>
</compile_context>

<pallas_src>
import jax
import jax.numpy as jnp
import numpy as np
from jax.experimental import pallas as pl
from jax.experimental.pallas import tpu as pltpu


def _lstm_cell_kernel(z_ref, cx_ref, w_ref, b_ref, out_ref):
    # gates = [x|hx] @ [Wx;Wh] + (bx+bh)   -> (B, 4H), f32 accumulation on MXU
    gates = (
        jnp.dot(z_ref[...], w_ref[...], preferred_element_type=jnp.float32)
        + b_ref[...]
    )
    H = cx_ref.shape[-1]

    # Whole-slab transcendentals (2 EUP passes over one slab), then pick lanes.
    sig = jax.nn.sigmoid(gates)
    th = jnp.tanh(gates)

    ingate     = sig[:, 0 * H:1 * H]
    forgetgate = sig[:, 1 * H:2 * H]
    cellgate   = th[:, 2 * H:3 * H]
    outgate    = sig[:, 3 * H:4 * H]

    cx = cx_ref[...].astype(jnp.float32)
    cy = cx * forgetgate + ingate * cellgate
    hy = outgate * jnp.tanh(cy)

    # Packed lane-dense output: [hy | cy]  (B, 2H), single store / DMA.
    out_ref[...] = jnp.concatenate([hy, cy], axis=-1).astype(out_ref.dtype)


def lstm_cell_forward(x, hx, cx, wx, bx, wh, bh, *,
                      mxu_dtype=jnp.float32, block_b=None):
    """Pallas LSTM cell forward.

    Args:
      x:  (..., D)  input
      hx: (..., H)  hidden state
      cx: (..., H)  cell state
      wx: (4H, D)   x2h.weight (PyTorch layout)
      bx: (4H,)     x2h.bias
      wh: (4H, H)   h2h.weight (PyTorch layout)
      bh: (4H,)     h2h.bias
      mxu_dtype: dtype fed to the MXU for z and W (f32 or bf16). Accumulation
        and all elementwise / cell-state math stay f32.
      block_b: optional batch tile (must divide B and be a multiple of 8);
        enables a "parallel" batch grid axis (2 TCs on v7x).

    Returns (hy, cy), each (B, H) float32.
    """
    # glue: flatten leading dims like torch's x.view(-1, x.size(-1))
    x = x.reshape(-1, x.shape[-1])
    hx = hx.reshape(-1, hx.shape[-1])
    cx = cx.reshape(-1, cx.shape[-1])
    B, D = x.shape
    H = hx.shape[-1]

    # Fuse inputs / weights / biases (glue-side, correctness-neutral).
    z = jnp.concatenate([x, hx], axis=-1).astype(mxu_dtype)          # (B, D+H)
    w = jnp.concatenate([wx.T, wh.T], axis=0).astype(mxu_dtype)      # (D+H, 4H)
    b = (bx + bh).reshape(1, 4 * H).astype(jnp.float32)              # (1, 4H)
    cx = cx.astype(jnp.float32)

    # Batch tiling (only when it satisfies the (8,128) block constraint).
    if block_b is None or B % block_b != 0 or block_b % 8 != 0:
        block_b = B
    grid = (B // block_b,)

    out = pl.pallas_call(
        _lstm_cell_kernel,
        out_shape=jax.ShapeDtypeStruct((B, 2 * H), jnp.float32),
        grid=grid,
        in_specs=[
            pl.BlockSpec((block_b, D + H), lambda i: (i, 0)),   # z: streamed per tile
            pl.BlockSpec((block_b, H),     lambda i: (i, 0)),   # cx: streamed per tile
            pl.BlockSpec((D + H, 4 * H),   lambda i: (0, 0)),   # W: VMEM-resident
            pl.BlockSpec((1, 4 * H),       lambda i: (0, 0)),   # b: VMEM-resident
        ],
        out_specs=pl.BlockSpec((block_b, 2 * H), lambda i: (i, 0)),
        compiler_params=pltpu.CompilerParams(
            dimension_semantics=("parallel",)),
    )(z, cx, w, b)

    hy = out[:, :H]
    cy = out[:, H:]
    return hy, cy


def init_lstm_params(key, input_size, hidden_size):
    """Deterministic init matching reset_parameters(): U(-std, std), std=1/sqrt(H)."""
    std = 1.0 / np.sqrt(hidden_size)
    k1, k2, k3, k4 = jax.random.split(key, 4)
    # PyTorch shapes: x2h.weight (4H, D), x2h.bias (4H,), h2h.weight (4H, H), h2h.bias (4H,)
    wx = jax.random.uniform(k1, (4 * hidden_size, input_size), jnp.float32, -std, std)
    bx = jax.random.uniform(k2, (4 * hidden_size,), jnp.float32, -std, std)
    wh = jax.random.uniform(k3, (4 * hidden_size, hidden_size), jnp.float32, -std, std)
    bh = jax.random.uniform(k4, (4 * hidden_size,), jnp.float32, -std, std)
    return wx, bx, wh, bh


def lstm_cell_reference(x, hx, cx, wx, bx, wh, bh):
    """Pure-JAX reference replicating the PyTorch forward exactly (f32)."""
    x = x.reshape(-1, x.shape[-1])
    gates = x @ wx.T + bx + hx @ wh.T + bh
    i, f, g, o = jnp.split(gates, 4, axis=1)
    i = jax.nn.sigmoid(i)
    f = jax.nn.sigmoid(f)
    g = jnp.tanh(g)
    o = jax.nn.sigmoid(o)
    cy = cx * f + i * g
    hy = o * jnp.tanh(cy)
    return hy, cy


if __name__ == "__main__":
    B = 8           # batch
    D = 32          # input_size
    H = 32          # hidden_size  (4H = 128 -> lane-dense gate slab)

    key = jax.random.PRNGKey(0)
    kp, kx, kh, kc = jax.random.split(key, 4)

    wx, bx, wh, bh = init_lstm_params(kp, D, H)
    x = jax.random.normal(kx, (B, D), jnp.float32)
    hx = jax.random.normal(kh, (B, H), jnp.float32)
    cx = jax.random.normal(kc, (B, H), jnp.float32)

    hy_ref, cy_ref = lstm_cell_reference(x, hx, cx, wx, bx, wh, bh)

    # f32 MXU path: bit-accurate vs. reference up to f32 matmul rounding.
    hy, cy = lstm_cell_forward(x, hx, cx, wx, bx, wh, bh,
                               mxu_dtype=jnp.float32)
    jax.block_until_ready((hy, cy))
    np.testing.assert_allclose(np.asarray(hy), np.asarray(hy_ref), rtol=1e-5, atol=1e-5)
    np.testing.assert_allclose(np.asarray(cy), np.asarray(cy_ref), rtol=1e-5, atol=1e-5)

    # bf16 MXU-input fast path (v6e/v7x): f32 accumulation + f32 state math,
    # so only input-rounding error remains -> loose tolerance.
    hy_bf, cy_bf = lstm_cell_forward(x, hx, cx, wx, bx, wh, bh,
                                     mxu_dtype=jnp.bfloat16)
    jax.block_until_ready((hy_bf, cy_bf))
    np.testing.assert_allclose(np.asarray(hy_bf), np.asarray(hy_ref), rtol=5e-2, atol=5e-2)
    np.testing.assert_allclose(np.asarray(cy_bf), np.asarray(cy_ref), rtol=5e-2, atol=5e-2)

    print("KERNEL_OK")
</pallas_src>

<mosaic_0001>
module attributes {stable_mosaic.version = 11 : i64} {
  func.func @_lstm_cell_kernel(%arg0: i32, %arg1: memref<8x64xf32, #tpu.memory_space<vmem>>, %arg2: memref<8x32xf32, #tpu.memory_space<vmem>>, %arg3: memref<64x128xf32, #tpu.memory_space<vmem>>, %arg4: memref<1x128xf32, #tpu.memory_space<vmem>>, %arg5: memref<8x64xf32, #tpu.memory_space<vmem>>) attributes {dimension_semantics = [#tpu.dimension_semantics<parallel>], iteration_bounds = array<i64: 1>, scalar_prefetch = 0 : i64, scratch_operands = 0 : i64, tpu.core_type = #tpu.core_type<tc>, window_params = [{transform_indices = @transform_0, window_bounds = array<i64: 8, 64>}, {transform_indices = @transform_1, window_bounds = array<i64: 8, 32>}, {pipeline_mode = #tpu.pipeline_mode<synchronous>, transform_indices = @transform_2, window_bounds = array<i64: 64, 128>}, {pipeline_mode = #tpu.pipeline_mode<synchronous>, transform_indices = @transform_3, window_bounds = array<i64: 1, 128>}, {transform_indices = @transform_4, window_bounds = array<i64: 8, 64>}]} {
    %c0 = arith.constant 0 : index
    %c0_0 = arith.constant 0 : index
    %0 = vector.load %arg1[%c0, %c0_0] : memref<8x64xf32, #tpu.memory_space<vmem>>, vector<8x64xf32>
    %c0_1 = arith.constant 0 : index
    %c0_2 = arith.constant 0 : index
    %1 = vector.load %arg3[%c0_1, %c0_2] : memref<64x128xf32, #tpu.memory_space<vmem>>, vector<64x128xf32>
    %cst = arith.constant dense<0.000000e+00> : vector<8x128xf32>
    %2 = tpu.matmul %0, %1, %cst {dimension_numbers = #tpu.dot_dimension_numbers<[1], [0], [0], [1], [0, 0, 1, 1], [], []>} : vector<8x64xf32>, vector<64x128xf32>, vector<8x128xf32> -> vector<8x128xf32>
    %c0_3 = arith.constant 0 : index
    %c0_4 = arith.constant 0 : index
    %3 = vector.load %arg4[%c0_3, %c0_4] : memref<1x128xf32, #tpu.memory_space<vmem>>, vector<1x128xf32>
    %4 = vector.broadcast %3 : vector<1x128xf32> to vector<8x128xf32>
    %5 = arith.addf %2, %4 : vector<8x128xf32>
    %6 = arith.negf %5 : vector<8x128xf32>
    %7 = math.exp %6 : vector<8x128xf32>
    %cst_5 = arith.constant 1.000000e+00 : f32
    %8 = vector.broadcast %cst_5 : f32 to vector<8x128xf32>
    %9 = arith.addf %8, %7 : vector<8x128xf32>
    %10 = arith.divf %8, %9 : vector<8x128xf32>
    %11 = math.tanh %5 : vector<8x128xf32>
    %12 = vector.extract_strided_slice %10 {offsets = [0, 0], sizes = [8, 32], strides = [1, 1]} : vector<8x128xf32> to vector<8x32xf32>
    %13 = vector.extract_strided_slice %10 {offsets = [0, 32], sizes = [8, 32], strides = [1, 1]} : vector<8x128xf32> to vector<8x32xf32>
    %14 = vector.extract_strided_slice %11 {offsets = [0, 64], sizes = [8, 32], strides = [1, 1]} : vector<8x128xf32> to vector<8x32xf32>
    %15 = vector.extract_strided_slice %10 {offsets = [0, 96], sizes = [8, 32], strides = [1, 1]} : vector<8x128xf32> to vector<8x32xf32>
    %c0_6 = arith.constant 0 : index
    %c0_7 = arith.constant 0 : index
    %16 = vector.load %arg2[%c0_6, %c0_7] : memref<8x32xf32, #tpu.memory_space<vmem>>, vector<8x32xf32>
    %17 = arith.mulf %16, %13 : vector<8x32xf32>
    %18 = arith.mulf %12, %14 : vector<8x32xf32>
    %19 = arith.addf %17, %18 : vector<8x32xf32>
    %20 = math.tanh %19 : vector<8x32xf32>
    %21 = arith.mulf %15, %20 : vector<8x32xf32>
    %22 = tpu.concatenate %21, %19 in 1 : vector<8x32xf32>, vector<8x32xf32> -> vector<8x64xf32>
    %c0_8 = arith.constant 0 : index
    %c0_9 = arith.constant 0 : index
    %23 = vector.load %arg5[%c0_8, %c0_9] : memref<8x64xf32, #tpu.memory_space<vmem>>, vector<8x64xf32>
    tpu.vector_store %arg5[%c0_8, %c0_9], %22 {strides = array<i32>} : memref<8x64xf32, #tpu.memory_space<vmem>>, vector<8x64xf32>,
    return
  }
  func.func @transform_0(%arg0: i32) -> (i32, i32) {
    %c0_i32 = arith.constant 0 : i32
    %c0_i32_0 = arith.constant 0 : i32
    return %arg0, %c0_i32 : i32, i32
  }
  func.func @transform_1(%arg0: i32) -> (i32, i32) {
    %c0_i32 = arith.constant 0 : i32
    %c0_i32_0 = arith.constant 0 : i32
    return %arg0, %c0_i32 : i32, i32
  }
  func.func @transform_2(%arg0: i32) -> (i32, i32) {
    %c0_i32 = arith.constant 0 : i32
    %c0_i32_0 = arith.constant 0 : i32
    %c0_i32_1 = arith.constant 0 : i32
    return %c0_i32, %c0_i32_0 : i32, i32
  }
  func.func @transform_3(%arg0: i32) -> (i32, i32) {
    %c0_i32 = arith.constant 0 : i32
    %c0_i32_0 = arith.constant 0 : i32
    %c0_i32_1 = arith.constant 0 : i32
    return %c0_i32, %c0_i32_0 : i32, i32
  }
  func.func @transform_4(%arg0: i32) -> (i32, i32) {
    %c0_i32 = arith.constant 0 : i32
    %c0_i32_0 = arith.constant 0 : i32
    return %arg0, %c0_i32 : i32, i32
  }
}

</mosaic_0001>

<bundles_post_ra>
// kernel: tpu_custom_call.1
= control target key start
LH: loop header
LB: loop body
LE: loop exit
PB: predicated region body
PF: predicated region fallthrough
CT: control target
= control target key end

     0   :  { %9 = vsyncpa [#allocation3], 0  ;;  %s444_s0 = inlined_call_operand.hbm [shape: f32[8,64], index: 0, kind: input, shape index: {}]   ;;  %s445_s1 = inlined_call_operand.hbm [shape: f32[8,32], index: 1, kind: input, shape index: {}]   ;;  %s446_s2 = inlined_call_operand.hbm [shape: f32[64,128], index: 2, kind: input, shape index: {}]   ;;  %s447_s3 = inlined_call_operand.vmem [shape: f32[1,128], index: 3, kind: input, shape index: {}]   ;;  %s448_s4 = inlined_call_operand.hbm [shape: f32[8,64], index: 4, kind: output, shape index: {}]  }
   0x1   :  { %10 = vsyncpa [#allocation6], 0 }
   0x2   :  { %11 = vsyncpa [#allocation4], 0  ;;  %s354_s15 = smov [#allocation5]   ;;  %s355_s17 = smov [#allocation2]  }
   0x3   :  { %s28_s16 = sshll.u32 %s354_s15, 4  ;;  %s18_s18 = sshll.u32 %s355_s17, 4  ;;  %s29_s16 = int_to_ptr.vmem [resolvable:$true] %s28_s16  ;;  %s19_s18 = int_to_ptr.vmem [resolvable:$true] %s18_s18 }
   0x4   :  { %s260_s21 = scalar_lea.hbm %s445_s1, 128 }
   0x5   :  { %p261_p0 = scmp.ne.s32.totalorder %s445_s1, %s260_s21  ;;  %p264_p1 = scmp.lt.u32.totalorder %s260_s21, %s445_s1 }
   0x7   :  { %p266_p2 = pnand %p264_p1, %p261_p0 }
   0x9   :  { %269 = shalt.err (!%p266_p2)
}
   0xa   :  { %s270_s26 = scalar_lea.vmem %s29_s16, 128  ;;  %p275_p4 = scmp.lt.s32.totalorder %s29_s16, %s29_s16 }
   0xb   :  { %p271_p3 = scmp.ne.s32.totalorder %s29_s16, %s270_s26  ;;  %p276_p5 = scmp.lt.s32.totalorder %s270_s26, %s270_s26 }
   0xd   :  { %p277_p6 = por %p276_p5, %p275_p4 }
   0xf   :  { %p278_p7 = pnand %p277_p6, %p271_p3 }
  0x11   :  { %281 = shalt.err (!%p278_p7)
}
  0x12   :  { %31 = dma.hbm_to_vmem [thread:$0]  %s445_s1, 128, %s29_s16, [#allocation6]  }
  0x13   :  { %s282_s5 = scalar_lea.hbm %s444_s0, 128 }
  0x14   :  { %p283_p8 = scmp.ne.s32.totalorder %s444_s0, %s282_s5  ;;  %p286_p9 = scmp.lt.u32.totalorder %s282_s5, %s444_s0 }
  0x16   :  { %p288_p10 = pnand %p286_p9, %p283_p8 }
  0x18   :  { %291 = shalt.err (!%p288_p10)
}
  0x19   :  { %s292_s10 = scalar_lea.vmem %s19_s18, 128  ;;  %p297_p12 = scmp.lt.s32.totalorder %s19_s18, %s19_s18 }
  0x1a   :  { %p293_p11 = scmp.ne.s32.totalorder %s19_s18, %s292_s10  ;;  %p298_p13 = scmp.lt.s32.totalorder %s292_s10, %s292_s10 }
  0x1c   :  { %p299_p0 = por %p298_p13, %p297_p12 }
  0x1e   :  { %p300_p1 = pnand %p299_p0, %p293_p11 }
  0x20   :  { %303 = shalt.err (!%p300_p1)
}
  0x21   :  { %21 = dma.hbm_to_vmem [thread:$0]  %s444_s0, 128, %s19_s18, [#allocation3]  }
  0x22   :  { %s356_s12 = smov [#allocation7]   ;;  %s304_s16 = scalar_lea.hbm %s446_s2, 1024 }
  0x23   :  { %s37_s13 = sshll.u32 %s356_s12, 4  ;;  %p305_p2 = scmp.ne.s32.totalorder %s446_s2, %s304_s16  ;;  %s38_s13 = int_to_ptr.vmem [resolvable:$true] %s37_s13 }
  0x24   :  { %p308_p3 = scmp.lt.u32.totalorder %s304_s16, %s446_s2 }
  0x26   :  { %p310_p4 = pnand %p308_p3, %p305_p2 }
  0x28   :  { %313 = shalt.err (!%p310_p4)
}
  0x29   :  { %s314_s22 = scalar_lea.vmem %s38_s13, 1024  ;;  %p319_p6 = scmp.lt.s32.totalorder %s38_s13, %s38_s13 }
  0x2a   :  { %p315_p5 = scmp.ne.s32.totalorder %s38_s13, %s314_s22  ;;  %p320_p7 = scmp.lt.s32.totalorder %s314_s22, %s314_s22 }
  0x2c   :  { %p321_p8 = por %p320_p7, %p319_p6 }
  0x2e   :  { %p322_p9 = pnand %p321_p8, %p315_p5 }
  0x30   :  { %325 = shalt.err (!%p322_p9)
}
  0x31   :  { %s357_s0 = smov 128   ;;  %s358_s18 = smov 8  }
  0x32   :  { %43 = dma.hbm_to_vmem [thread:$0]  %s446_s2, 1024, %s38_s13, [#allocation6], %s357_s0, %s357_s0, %s358_s18  }
  0x33   :  { %348 = dma.done.wait [#allocation3], 128  }
  0x34   :  { %349 = vsyncadd [#allocation3], 4294967168 }
  0x35   :  { %350 = dma.done.wait [#allocation6], 1152  }
  0x36   :  { %351 = vsyncadd [#allocation6], 4294966144  ;;  %v359_v0 = vmov 0.0|0.0   ;;  %vm360_vm0 = vmmov 0   ;;  %v361_v1 = vmov 0.0   ;;  %v56_v2 = vld [vmem:[#allocation7] sm:$0xff] }
  0x37   :  { %228 = vmatprep.subr.bf16.mxu0 %v359_v0  ;;  %225 = vmatprep.mubr.msk.f32.mxu0 %vm360_vm0, %v361_v1  ;;  %v57_v3 = vld [vmem:[#allocation7 + $0x8] sm:$0xff]  ;;  %v58_v4 = vld [vmem:[#allocation7 + $0x10] sm:$0xff]  ;;  %v59_v6 = vld [vmem:[#allocation7 + $0x18] sm:$0xff]  ;;  %vm71_vm1 = vcmask 523264   ;;  %s362_s26 = smov 96   ;;  %s363_s27 = smov 64  }
  0x38   :  { %v229_v5 = vpack.c.bf16 %v57_v3, %v56_v2  ;;  %v232_v7 = vpack.c.bf16 %v59_v6, %v58_v4  ;;  %v60_v8 = vld [vmem:[#allocation7 + $0x20] sm:$0xff]  ;;  %v61_v9 = vld [vmem:[#allocation7 + $0x28] sm:$0xff]  ;;  %v62_v11 = vld [vmem:[#allocation7 + $0x30] sm:$0xff]  ;;  %s365_s28 = smov [#allocation8]   ;;  %vm178_vm2 = vcmask 261120  }
  0x39   :  { %v235_v10 = vpack.c.bf16 %v61_v9, %v60_v8  ;;  %v63_v12 = vld [vmem:[#allocation7 + $0x38] sm:$0xff]  ;;  %v55_v14 = vld [vmem:[#allocation2] sm:$0xff]  ;;  %s187_s29 = sshll.u32 %s365_s28, 4  ;;  %s188_s29 = int_to_ptr.vmem [resolvable:$true] %s187_s29 }
  0x3a   :  { %230 = vmatpush3.bf16.msra.mxu0 %v229_v5  ;;  %v238_v13 = vpack.c.bf16 %v63_v12, %v62_v11  ;;  %v197_v15 = vld [vmem:[%s447_s3] ss:$0 sm:$0xff]  ;;  %v152_v25 = vld [vmem:[#allocation5] sm:$0xff]  ;;  %s364_s3 = smov 32   ;;  %s326_s30 = scalar_lea.vmem %s188_s29, 128 }
  0x3b   :  { %231 = vmatprep.subr.bf16.mxu0 %v359_v0  ;;  %p327_p10 = scmp.ne.s32.totalorder %s188_s29, %s326_s30  ;;  %p331_p11 = scmp.lt.s32.totalorder %s188_s29, %s188_s29 }
  0x3c   :  { %p332_p12 = scmp.lt.s32.totalorder %s326_s30, %s326_s30 }
  0x3e   :  { %233 = vmatpush3.bf16.msra.mxu0 %v232_v7  ;;  %p333_p13 = por %p332_p12, %p331_p11 }
  0x3f   :  { %234 = vmatprep.subr.bf16.mxu0 %v359_v0 }
  0x40   :  { %p334_p0 = pnand %p333_p13, %p327_p10 }
  0x42   :  { %236 = vmatpush3.bf16.msra.mxu0 %v235_v10 }
  0x43   :  { %237 = vmatprep.subr.bf16.mxu0 %v359_v0 }
  0x46   :  { %239 = vmatpush3.bf16.msra.mxu0 %v238_v13 }
  0x49   :  { %226 = vmatmul.mubr.msk.f32.vlgmr.msra.gmra.mrb[0].mxu0 %vm71_vm1, %v55_v14 }
 0x11c   :  { %v141_v16 = vpop.f32.mrb[0].mxu0 }
 0x11d   :  { %v142_v17 = vadd.f32 %v197_v15, %v141_v16  ;;  %v227_v18 = vpop.f32.mrb[1].mxu0 }
 0x11f   :  { %v199_v19 = vmul.f32 -1.442695, %v142_v17 }
 0x121   :  { %252 = vpow2.f32 %v199_v19 }
 0x12b   :  { %v253_v20 = vpop.eup %252 }
 0x12c   :  { %v148_v21 = vadd.f32 1.0, %v253_v20 }
 0x12e   :  { %254 = vrcp.f32 %v148_v21 }
 0x12f   :  { %256 = vtanh.f32 %v142_v17 }
 0x138   :  { %v255_v22 = vpop.eup %254 }
 0x139   :  { %154 = vrot.lane.b32.xlu0 %v255_v22, %s362_s26  ;;  %v257_v23 = vpop.eup %256 }
 0x13d   :  { %159 = vrot.lane.b32.xlu0 %v257_v23, %s363_s27 }
 0x1ab   :  { %v155_v24 = vpop.permute.xlu0 %154 }
 0x1ac   :  { %v157_v27 = vmul.f32 %v155_v24, %v152_v25 }
 0x1af   :  { %v160_v26 = vpop.permute.xlu0 %159 }
 0x1b0   :  { %v162_v28 = vmul.f32 %v255_v22, %v160_v26 }
 0x1b2   :  { %v163_v29 = vadd.f32 %v162_v28, %v157_v27 }
 0x1b4   :  { %258 = vtanh.f32 %v163_v29  ;;  %175 = vrot.lane.b32.xlu0 %v163_v29, %s364_s3 }
 0x1be   :  { %v259_v30 = vpop.eup %258 }
 0x1bf   :  { %166 = vrot.lane.b32.xlu1 %v259_v30, %s362_s26 }
 0x226   :  { %v176_v33 = vpop.permute.xlu0 %175 }
 0x231   :  { %v167_v31 = vpop.permute.xlu1 %166 }
 0x232   :  { %v169_v32 = vmul.f32 %v255_v22, %v167_v31 }
 0x234   :  { %171 = vrot.lane.b32.xlu1 %v169_v32, %s364_s3 }
 0x2a6   :  { %v172_v34 = vpop.permute.xlu1 %171 }
 0x2a7   :  { %v179_v35 = vsel %vm178_vm2, %v172_v34, %v176_v33 }
 0x2a8   :  { %180 = vst.msk [vmem:[#allocation8] sm:$0xff] %vm71_vm1, %v179_v35 }
 0x2a9   :  { %337 = shalt.err (!%p334_p0)
}
 0x2aa   :  { %s338_s7 = scalar_lea.hbm %s448_s4, 128 }
 0x2ab   :  { %p339_p1 = scmp.ne.s32.totalorder %s448_s4, %s338_s7  ;;  %p342_p2 = scmp.lt.u32.totalorder %s338_s7, %s448_s4 }
 0x2ad   :  { %p344_p3 = pnand %p342_p2, %p339_p1 }
 0x2af   :  { %347 = shalt.err (!%p344_p3)
}
 0x2b0   :  { %190 = dma.vmem_to_hbm [thread:$0]  %s188_s29, 128, %s448_s4, [#allocation4]  }
 0x2b1   :  { %352 = dma.done.wait [#allocation4], 128  }
 0x2b2   :  { %353 = vsyncadd [#allocation4], 4294967168 }
 0x2b3   :  { %194 = vsyncpa [#allocation3], 1 }
 0x2b4   :  { %195 = vsyncpa [#allocation6], 1 }
 0x2b5   :  { %196 = vsyncpa [#allocation4], 1 }

</bundles_post_ra>
